<compile_context>
chip_gen: v7x
topology: tpu7x:2x2x1
jax: 0.10.0
libtpu: 0.0.40
codegen_flags: <defaults>
</compile_context>

<pallas_src>
import functools

import jax
import jax.numpy as jnp
from jax.experimental import pallas as pl
from jax.experimental.pallas import tpu as pltpu

_LANES = 128            # lane-dense last dim -> 100% lane utilization for any H, W
_MAX_BLOCK_ROWS = 512   # 512 * 128 * 4 B = 256 KiB per operand per grid step


def _round_up(v, m):
    return ((v + m - 1) // m) * m


def _n_and_mask(x_ref, t_ref, *, use_log, clamp_val):
    """|log(clamp(x)) - log(clamp(t))| (or |x - t|), zeroed where target <= 0."""
    x = x_ref[...].astype(jnp.float32)
    t = t_ref[...].astype(jnp.float32)
    mask = t > 0.0                           # default torch mask: target > 0
    if use_log:
        n = jnp.log(jnp.maximum(x, clamp_val)) - jnp.log(jnp.maximum(t, clamp_val))
    else:
        n = x - t
    n = jnp.where(mask, jnp.abs(n), 0.0)     # == n * mask (n is finite here)
    return n, mask


def _stats_kernel(x_ref, t_ref, max_ref, cnt_ref, *, use_log, clamp_val):
    # Each program writes its own (1,1,1) partial block -> safe with "parallel".
    n, mask = _n_and_mask(x_ref, t_ref, use_log=use_log, clamp_val=clamp_val)
    max_ref[...] = jnp.max(n).reshape(1, 1, 1)
    cnt_ref[...] = jnp.sum(mask.astype(jnp.float32)).reshape(1, 1, 1)


def _berhu_kernel(c_ref, x_ref, t_ref, sum_ref, *, use_log, clamp_val):
    n, _ = _n_and_mask(x_ref, t_ref, use_log=use_log, clamp_val=clamp_val)
    c = c_ref[0, 0]
    inv_den = 1.0 / (2.0 * c + 1e-9)         # one scalar reciprocal, no per-pixel divide
    quad = (n * n + c * c) * inv_den
    loss = jnp.where(n < c, n, quad)
    sum_ref[...] = jnp.sum(loss).reshape(1, 1, 1)


def laina_berhu_loss(pred, target, mask=None, *, size_average=True,
                     use_log=True, clamp_val=1e-9):
    """Forward pass of LainaBerHuLoss (size_average=True, use_logs=True defaults)."""
    if mask is not None:
        # TODO(synk): explicit mask argument not implemented; default mask (target > 0) is.
        raise NotImplementedError("explicit mask not supported; default mask = target > 0")

    total = int(pred.size)
    rows = pl.cdiv(total, _LANES)
    block_rows = min(_MAX_BLOCK_ROWS, _round_up(rows, 8))
    num_blocks = pl.cdiv(rows, block_rows)
    padded_rows = num_blocks * block_rows
    pad = padded_rows * _LANES - total

    # Flatten is free (contiguous); pad only the remainder.  Padded elements have
    # target == 0 -> masked out -> contribute 0 to max, count and sum.
    x = jnp.reshape(pred, (-1,))
    t = jnp.reshape(target, (-1,))
    if pad:
        x = jnp.pad(x, (0, pad))
        t = jnp.pad(t, (0, pad))
    x = x.reshape(padded_rows, _LANES)
    t = t.reshape(padded_rows, _LANES)

    data_spec = pl.BlockSpec((block_rows, _LANES), lambda i: (i, 0))
    part_spec = pl.BlockSpec((1, 1, 1), lambda i: (i, 0, 0))
    part_shape = jax.ShapeDtypeStruct((num_blocks, 1, 1), jnp.float32)
    cparams = pltpu.CompilerParams(dimension_semantics=("parallel",))
    clamp_val = float(clamp_val)

    # Pass 1: per-block partial max(n) and valid-pixel count.
    pmax, pcnt = pl.pallas_call(
        functools.partial(_stats_kernel, use_log=use_log, clamp_val=clamp_val),
        out_shape=(part_shape, part_shape),
        grid_spec=pltpu.PrefetchScalarGridSpec(
            num_scalar_prefetch=0,
            grid=(num_blocks,),
            in_specs=[data_spec, data_spec],
            out_specs=[part_spec, part_spec],
        ),
        compiler_params=cparams,
    )(x, t)

    c = 0.2 * jnp.max(pmax)                  # BerHu threshold (global over n)
    mask_count = jnp.sum(pcnt)
    c_arr = jnp.reshape(c, (1, 1)).astype(jnp.float32)

    # Pass 2: per-block partial BerHu sums given the scalar threshold c.
    psum = pl.pallas_call(
        functools.partial(_berhu_kernel, use_log=use_log, clamp_val=clamp_val),
        out_shape=part_shape,
        grid_spec=pltpu.PrefetchScalarGridSpec(
            num_scalar_prefetch=0,
            grid=(num_blocks,),
            in_specs=[pl.BlockSpec((1, 1), lambda i: (0, 0)),   # scalar c
                      data_spec, data_spec],
            out_specs=part_spec,
        ),
        compiler_params=cparams,
    )(c_arr, x, t)

    total_loss = jnp.sum(psum)
    if size_average:
        return total_loss / mask_count
    return total_loss


def _reference(pred, target, *, size_average=True, use_log=True, clamp_val=1e-9):
    """Pure-JAX mirror of the PyTorch forward (default mask = target > 0)."""
    m = (target > 0).astype(jnp.float32)
    if use_log:
        n = jnp.log(jnp.maximum(pred, clamp_val)) - jnp.log(jnp.maximum(target, clamp_val))
    else:
        n = pred - target
    n = jnp.abs(n) * m
    c = 0.2 * jnp.max(n)
    loss = jnp.where(n < c, n, (n * n + c * c) / (2.0 * c + 1e-9))
    tot = jnp.sum(loss)
    return tot / jnp.sum(m) if size_average else tot


if __name__ == "__main__":
    key = jax.random.PRNGKey(0)
    k1, k2 = jax.random.split(key)
    N, C, H, W = 2, 1, 16, 16
    pred = jax.random.uniform(k1, (N, C, H, W), jnp.float32, minval=0.1, maxval=10.0)
    target = jax.random.uniform(k2, (N, C, H, W), jnp.float32, minval=0.0, maxval=10.0)
    target = jnp.where(target > 1.0, target, 0.0)   # some invalid (masked-out) pixels

    loss = laina_berhu_loss(pred, target)
    jax.block_until_ready(loss)

    ref = _reference(pred, target)
    if abs(float(loss) - float(ref)) > 1e-4 * max(1.0, abs(float(ref))):
        raise AssertionError(f"mismatch: kernel={float(loss)} ref={float(ref)}")
    print("KERNEL_OK")
</pallas_src>

<mosaic_0001>
module attributes {stable_mosaic.version = 11 : i64} {
  func.func @_stats_kernel(%arg0: i32, %arg1: memref<8x128xf32, #tpu.memory_space<vmem>>, %arg2: memref<8x128xf32, #tpu.memory_space<vmem>>, %arg3: memref<1x1x1xf32, #tpu.memory_space<vmem>>, %arg4: memref<1x1x1xf32, #tpu.memory_space<vmem>>) attributes {dimension_semantics = [#tpu.dimension_semantics<parallel>], iteration_bounds = array<i64: 1>, scalar_prefetch = 0 : i64, scratch_operands = 0 : i64, tpu.core_type = #tpu.core_type<tc>, window_params = [{transform_indices = @transform_0, window_bounds = array<i64: 8, 128>}, {transform_indices = @transform_1, window_bounds = array<i64: 8, 128>}, {transform_indices = @transform_2, window_bounds = array<i64: 1, 1, 1>}, {transform_indices = @transform_3, window_bounds = array<i64: 1, 1, 1>}]} {
    %c0 = arith.constant 0 : index
    %c0_0 = arith.constant 0 : index
    %0 = vector.load %arg1[%c0, %c0_0] : memref<8x128xf32, #tpu.memory_space<vmem>>, vector<8x128xf32>
    %c0_1 = arith.constant 0 : index
    %c0_2 = arith.constant 0 : index
    %1 = vector.load %arg2[%c0_1, %c0_2] : memref<8x128xf32, #tpu.memory_space<vmem>>, vector<8x128xf32>
    %cst = arith.constant 0.000000e+00 : f32
    %2 = vector.broadcast %cst : f32 to vector<8x128xf32>
    %3 = arith.cmpf ogt, %1, %2 : vector<8x128xf32>
    %cst_3 = arith.constant 9.99999971E-10 : f32
    %4 = vector.broadcast %cst_3 : f32 to vector<8x128xf32>
    %5 = arith.maximumf %0, %4 : vector<8x128xf32>
    %6 = math.log %5 : vector<8x128xf32>
    %cst_4 = arith.constant 9.99999971E-10 : f32
    %7 = vector.broadcast %cst_4 : f32 to vector<8x128xf32>
    %8 = arith.maximumf %1, %7 : vector<8x128xf32>
    %9 = math.log %8 : vector<8x128xf32>
    %10 = arith.subf %6, %9 : vector<8x128xf32>
    %11 = math.absf %10 : vector<8x128xf32>
    %cst_5 = arith.constant 0.000000e+00 : f32
    %12 = vector.broadcast %cst_5 : f32 to vector<8x128xf32>
    %13 = arith.select %3, %11, %12 : vector<8x128xi1>, vector<8x128xf32>
    %14 = vector.shape_cast %13 : vector<8x128xf32> to vector<1x8x128xf32>
    %cst_6 = arith.constant dense<0xFF800000> : vector<1xf32>
    %15 = vector.multi_reduction <maximumf>, %14, %cst_6 [1, 2] : vector<1x8x128xf32> to vector<1xf32>
    %16 = vector.shape_cast %15 : vector<1xf32> to vector<1x1x1xf32>
    %17 = vector.extract %16[0, 0, 0] : f32 from vector<1x1x1xf32>
    %18 = vector.broadcast %17 : f32 to vector<1x1x1xf32>
    %c0_7 = arith.constant 0 : index
    %c0_8 = arith.constant 0 : index
    %c0_9 = arith.constant 0 : index
    %19 = vector.load %arg3[%c0_7, %c0_8, %c0_9] : memref<1x1x1xf32, #tpu.memory_space<vmem>>, vector<1x1x1xf32>
    tpu.vector_store %arg3[%c0_7, %c0_8, %c0_9], %18 {strides = array<i32>} : memref<1x1x1xf32, #tpu.memory_space<vmem>>, vector<1x1x1xf32>,
    %20 = arith.extui %3 : vector<8x128xi1> to vector<8x128xi32>
    %21 = arith.sitofp %20 : vector<8x128xi32> to vector<8x128xf32>
    %22 = vector.shape_cast %21 : vector<8x128xf32> to vector<1x8x128xf32>
    %cst_10 = arith.constant dense<0.000000e+00> : vector<1xf32>
    %23 = vector.multi_reduction <add>, %22, %cst_10 [1, 2] : vector<1x8x128xf32> to vector<1xf32>
    %24 = vector.shape_cast %23 : vector<1xf32> to vector<1x1x1xf32>
    %25 = vector.extract %24[0, 0, 0] : f32 from vector<1x1x1xf32>
    %26 = vector.broadcast %25 : f32 to vector<1x1x1xf32>
    %c0_11 = arith.constant 0 : index
    %c0_12 = arith.constant 0 : index
    %c0_13 = arith.constant 0 : index
    %27 = vector.load %arg4[%c0_11, %c0_12, %c0_13] : memref<1x1x1xf32, #tpu.memory_space<vmem>>, vector<1x1x1xf32>
    tpu.vector_store %arg4[%c0_11, %c0_12, %c0_13], %26 {strides = array<i32>} : memref<1x1x1xf32, #tpu.memory_space<vmem>>, vector<1x1x1xf32>,
    return
  }
  func.func @transform_0(%arg0: i32) -> (i32, i32) {
    %c0_i32 = arith.constant 0 : i32
    %c0_i32_0 = arith.constant 0 : i32
    return %arg0, %c0_i32 : i32, i32
  }
  func.func @transform_1(%arg0: i32) -> (i32, i32) {
    %c0_i32 = arith.constant 0 : i32
    %c0_i32_0 = arith.constant 0 : i32
    return %arg0, %c0_i32 : i32, i32
  }
  func.func @transform_2(%arg0: i32) -> (i32, i32, i32) {
    %c0_i32 = arith.constant 0 : i32
    %c0_i32_0 = arith.constant 0 : i32
    %c0_i32_1 = arith.constant 0 : i32
    return %arg0, %c0_i32, %c0_i32_0 : i32, i32, i32
  }
  func.func @transform_3(%arg0: i32) -> (i32, i32, i32) {
    %c0_i32 = arith.constant 0 : i32
    %c0_i32_0 = arith.constant 0 : i32
    %c0_i32_1 = arith.constant 0 : i32
    return %arg0, %c0_i32, %c0_i32_0 : i32, i32, i32
  }
}

</mosaic_0001>

<bundles_post_ra>
// kernel: tpu_custom_call.1
= control target key start
LH: loop header
LB: loop body
LE: loop exit
PB: predicated region body
PF: predicated region fallthrough
CT: control target
= control target key end

     0   :  { %9 = vsyncpa [#allocation3], 0  ;;  %s291_s0 = inlined_call_operand.hbm [shape: f32[8,128], index: 0, kind: input, shape index: {}]   ;;  %s292_s1 = inlined_call_operand.hbm [shape: f32[8,128], index: 1, kind: input, shape index: {}]   ;;  %s293_s2 = inlined_call_operand.hbm [shape: f32[1,1,1], index: 2, kind: output, shape index: {0}]   ;;  %s294_s3 = inlined_call_operand.hbm [shape: f32[1,1,1], index: 3, kind: output, shape index: {1}]  }
   0x1   :  { %10 = vsyncpa [#allocation6], 0 }
   0x2   :  { %11 = vsyncpa [#allocation4], 0 }
   0x3   :  { %12 = vsyncpa [#allocation9], 0  ;;  %s216_s12 = smov [#allocation2]   ;;  %s217_s14 = smov [#allocation5]  }
   0x4   :  { %s19_s13 = sshll.u32 %s216_s12, 4  ;;  %s29_s15 = sshll.u32 %s217_s14, 4  ;;  %s20_s13 = int_to_ptr.vmem [resolvable:$true] %s19_s13  ;;  %s30_s15 = int_to_ptr.vmem [resolvable:$true] %s29_s15 }
   0x5   :  { %s120_s18 = scalar_lea.hbm %s291_s0, 128 }
   0x6   :  { %p121_p0 = scmp.ne.s32.totalorder %s291_s0, %s120_s18  ;;  %p124_p1 = scmp.lt.u32.totalorder %s120_s18, %s291_s0 }
   0x8   :  { %p126_p2 = pnand %p124_p1, %p121_p0 }
   0xa   :  { %129 = shalt.err (!%p126_p2)
}
   0xb   :  { %s130_s23 = scalar_lea.vmem %s20_s13, 128  ;;  %p135_p4 = scmp.lt.s32.totalorder %s20_s13, %s20_s13 }
   0xc   :  { %p131_p3 = scmp.ne.s32.totalorder %s20_s13, %s130_s23  ;;  %p136_p5 = scmp.lt.s32.totalorder %s130_s23, %s130_s23 }
   0xe   :  { %p137_p6 = por %p136_p5, %p135_p4 }
  0x10   :  { %p138_p7 = pnand %p137_p6, %p131_p3 }
  0x12   :  { %141 = shalt.err (!%p138_p7)
}
  0x13   :  { %22 = dma.hbm_to_vmem [thread:$0]  %s291_s0, 128, %s20_s13, [#allocation3]  }
  0x14   :  { %s142_s28 = scalar_lea.hbm %s292_s1, 128 }
  0x15   :  { %p143_p8 = scmp.ne.s32.totalorder %s292_s1, %s142_s28  ;;  %p146_p9 = scmp.lt.u32.totalorder %s142_s28, %s292_s1 }
  0x17   :  { %p148_p10 = pnand %p146_p9, %p143_p8 }
  0x19   :  { %151 = shalt.err (!%p148_p10)
}
  0x1a   :  { %s152_s6 = scalar_lea.vmem %s30_s15, 128  ;;  %p157_p12 = scmp.lt.s32.totalorder %s30_s15, %s30_s15 }
  0x1b   :  { %p153_p11 = scmp.ne.s32.totalorder %s30_s15, %s152_s6  ;;  %p158_p13 = scmp.lt.s32.totalorder %s152_s6, %s152_s6 }
  0x1d   :  { %p159_p0 = por %p158_p13, %p157_p12 }
  0x1f   :  { %p160_p1 = pnand %p159_p0, %p153_p11 }
  0x21   :  { %163 = shalt.err (!%p160_p1)
}
  0x22   :  { %32 = dma.hbm_to_vmem [thread:$0]  %s292_s1, 128, %s30_s15, [#allocation6]  }
  0x23   :  { %208 = dma.done.wait [#allocation3], 128  }
  0x24   :  { %209 = vsyncadd [#allocation3], 4294967168 }
  0x25   :  { %210 = dma.done.wait [#allocation6], 128  }
  0x26   :  { %211 = vsyncadd [#allocation6], 4294967168  ;;  %v39_v0 = vld [vmem:[#allocation2] sm:$0xff]  ;;  %v40_v1 = vld [vmem:[#allocation5] sm:$0xff]  ;;  %v218_v11 = vmov 0.0   ;;  %s219_s1 = smov [#allocation7]  }
  0x27   :  { %v42_v2 = vmax.f32 %v39_v0, 1e-09  ;;  %v45_v3 = vmax.f32 %v40_v1, 1e-09  ;;  %vm41_vm0 = vcmp.gt.f32.partialorder %v40_v1, 0.0  ;;  %s82_s8 = sshll.u32 %s219_s1, 4  ;;  %s83_s8 = int_to_ptr.vmem [resolvable:$true] %s82_s8 }
  0x28   :  { %v106_v12 = vsel %vm41_vm0, 1.0, %v218_v11  ;;  %vm61_vm1 = vcmask 0   ;;  %s220_s10 = smov [#allocation8]   ;;  %s164_s12 = scalar_lea.vmem %s83_s8, 16 }
  0x29   :  { %116 = vlog2.f32 %v42_v2  ;;  %s92_s11 = sshll.u32 %s220_s10, 4  ;;  %p165_p2 = scmp.ne.s32.totalorder %s83_s8, %s164_s12  ;;  %s93_s11 = int_to_ptr.vmem [resolvable:$true] %s92_s11 }
  0x2a   :  { %118 = vlog2.f32 %v45_v3  ;;  %s168_s13 = scalar_lea.vmem %s83_s8, 32  ;;  %p169_p3 = scmp.lt.s32.totalorder %s83_s8, %s83_s8 }
  0x2b   :  { %p170_p4 = scmp.lt.s32.totalorder %s168_s13, %s164_s12 }
  0x2d   :  { %p171_p5 = por %p170_p4, %p169_p3 }
  0x2f   :  { %p172_p6 = pnand %p171_p5, %p165_p2 }
  0x33   :  { %v117_v4 = vpop.eup %116 }
  0x34   :  { %v119_v5 = vpop.eup %118  ;;  %v44_v6 = vmul.f32 0.6931472, %v117_v4 }
  0x35   :  { %v47_v7 = vmul.f32 0.6931472, %v119_v5 }
  0x37   :  { %v48_v8 = vsub.f32 %v44_v6, %v47_v7 }
  0x39   :  { %v49_v9 = vand.u32 2147483647, %v48_v8 }
  0x3b   :  { %v50_v10 = vsel %vm41_vm0, %v49_v9, 0.0 }
  0x3c   :  { %51 = vmax.xlane.f32.xlu0 %v50_v10 }
  0x40   :  { %65 = vadd.xlane.f32.xlu0 %v106_v12 }
  0xc9   :  { %v52_v13 = vpop.xlane.xlu0 %51 }
  0xca   :  { %v53_v14 = vrot.slane %v52_v13, 4 }
  0xcc   :  { %v54_v15 = vmax.f32 %v52_v13, %v53_v14 }
  0xcd   :  { %v66_v16 = vpop.xlane.xlu0 %65 }
  0xce   :  { %v55_v17 = vrot.slane %v54_v15, 2  ;;  %v67_v18 = vrot.slane %v66_v16, 4 }
  0xd0   :  { %v68_v19 = vadd.f32 %v67_v18, %v66_v16  ;;  %v56_v20 = vmax.f32 %v54_v15, %v55_v17 }
  0xd2   :  { %v69_v21 = vrot.slane %v68_v19, 2  ;;  %v57_v22 = vrot.slane %v56_v20, 1 }
  0xd4   :  { %v70_v23 = vadd.f32 %v69_v21, %v68_v19  ;;  %v58_v24 = vmax.f32 %v56_v20, %v57_v22 }
  0xd6   :  { %107 = vpush %v58_v24  ;;  %v71_v25 = vrot.slane %v70_v23, 1 }
  0xd8   :  { %v72_v26 = vadd.f32 %v71_v25, %v70_v23 }
  0xda   :  { %109 = vpush %v72_v26 }
 0x107   :  { %s108_s9 = spop %107 }
 0x108   :  { %v60_v27 = vstv %s108_s9 }
 0x109   :  { %62 = vst.msk [vmem:[#allocation7] sm:$0x1] %vm61_vm1, %v60_v27 }
 0x10a   :  { %175 = shalt.err (!%p172_p6)
}
 0x10b   :  { %s176_s16 = scalar_lea.hbm %s293_s2, 16 }
 0x10c   :  { %p177_p7 = scmp.ne.s32.totalorder %s293_s2, %s176_s16  ;;  %p180_p8 = scmp.lt.u32.totalorder %s176_s16, %s293_s2 }
 0x10e   :  { %p182_p9 = pnand %p180_p8, %p177_p7 }
 0x110   :  { %185 = shalt.err (!%p182_p9)
}
 0x111   :  { %85 = dma.vmem_to_hbm [thread:$0]  %s83_s8, 16, %s293_s2, [#allocation4]  }
 0x112   :  { %s110_s23 = spop %109  ;;  %s186_s24 = scalar_lea.vmem %s93_s11, 16 }
 0x113   :  { %v74_v28 = vstv %s110_s23  ;;  %p187_p10 = scmp.ne.s32.totalorder %s93_s11, %s186_s24  ;;  %s190_s25 = scalar_lea.vmem %s93_s11, 32 }
 0x114   :  { %75 = vst.msk [vmem:[#allocation8] sm:$0x1] %vm61_vm1, %v74_v28  ;;  %p191_p11 = scmp.lt.s32.totalorder %s93_s11, %s93_s11  ;;  %p192_p12 = scmp.lt.s32.totalorder %s190_s25, %s186_s24 }
 0x116   :  { %p193_p13 = por %p192_p12, %p191_p11 }
 0x118   :  { %p194_p0 = pnand %p193_p13, %p187_p10 }
 0x11a   :  { %197 = shalt.err (!%p194_p0)
}
 0x11b   :  { %s198_s28 = scalar_lea.hbm %s294_s3, 16 }
 0x11c   :  { %p199_p1 = scmp.ne.s32.totalorder %s294_s3, %s198_s28  ;;  %p202_p2 = scmp.lt.u32.totalorder %s198_s28, %s294_s3 }
 0x11e   :  { %p204_p3 = pnand %p202_p2, %p199_p1 }
 0x120   :  { %207 = shalt.err (!%p204_p3)
}
 0x121   :  { %95 = dma.vmem_to_hbm [thread:$0]  %s93_s11, 16, %s294_s3, [#allocation9]  }
 0x122   :  { %212 = dma.done.wait [#allocation4], 16  }
 0x123   :  { %213 = vsyncadd [#allocation4], 4294967280 }
 0x124   :  { %214 = dma.done.wait [#allocation9], 16  }
 0x125   :  { %215 = vsyncadd [#allocation9], 4294967280 }
 0x126   :  { %102 = vsyncpa [#allocation3], 1 }
 0x127   :  { %103 = vsyncpa [#allocation6], 1 }
 0x128   :  { %104 = vsyncpa [#allocation4], 1 }
 0x129   :  { %105 = vsyncpa [#allocation9], 1 }

</bundles_post_ra>
